<compile_context>
chip_gen: v6e
topology: v6e:2x2x1
jax: 0.10.0
libtpu: 0.0.40
codegen_flags: <defaults>
</compile_context>

<pallas_src>
import jax
import jax.numpy as jnp
from jax.experimental import pallas as pl
from jax.experimental.pallas import tpu as pltpu


def _grad_kernel(x_ref, mag_ref, v_ref, h_ref):
    # x_ref: (TB, H, W) channel-0 planes already in VMEM (no pre-padding).
    x = x_ref[...].astype(jnp.float32)
    _, H, W = x.shape

    # Edge masks reproducing F.conv2d(padding=1) zero boundary.
    row = jax.lax.broadcasted_iota(jnp.int32, x.shape, 1)
    col = jax.lax.broadcasted_iota(jnp.int32, x.shape, 2)
    first_row = row == 0
    last_row = row == H - 1
    first_col = col == 0
    last_col = col == W - 1

    # Row (sublane) shifts via XLU roll + mask:  up[i]=x[i-1], down[i]=x[i+1].
    up = jnp.where(first_row, 0.0, pltpu.roll(x, shift=1, axis=1))
    down = jnp.where(last_row, 0.0, pltpu.roll(x, shift=H - 1, axis=1))

    # Separable Sobel: smooth / difference along rows first.
    s = up + 2.0 * x + down          # column vector [1, 2, 1]
    d = up - down                    # column vector [1, 0, -1]

    # Column (lane) shifts via XLU roll + mask (lane-aligned, no relayout).
    s_l = jnp.where(first_col, 0.0, pltpu.roll(s, shift=1, axis=2))      # s[:, j-1]
    s_r = jnp.where(last_col, 0.0, pltpu.roll(s, shift=W - 1, axis=2))   # s[:, j+1]
    d_l = jnp.where(first_col, 0.0, pltpu.roll(d, shift=1, axis=2))
    d_r = jnp.where(last_col, 0.0, pltpu.roll(d, shift=W - 1, axis=2))

    # kernel_v = [1,2,1]^T x [1,0,-1]   kernel_h = [1,0,-1]^T x [1,2,1]
    v = s_l - s_r
    h = d_l + 2.0 * d + d_r
    mag = jnp.sqrt(v * v + h * h + 1e-6)

    mag_ref[...] = mag.astype(mag_ref.dtype)
    v_ref[...] = v.astype(v_ref.dtype)
    h_ref[...] = h.astype(h_ref.dtype)


def get_gradient(x, *, vmem_block_budget_bytes=12 * 1024 * 1024):
    """Pallas equivalent of Get_gradient.forward.

    x: [B, C, H, W]. Returns (magnitude, grad_v, grad_h), each [B, 1, H, W]
    (Sobel pair applied to channel 0 only, matching the PyTorch module).
    """
    B, C, H, W = x.shape
    itemsize = jnp.dtype(x.dtype).itemsize
    plane_bytes = H * W * itemsize

    # Per-block live footprint ~ (1 input x 2 bufs + 3 outputs x 2 bufs) * TB * plane.
    max_tb = max(1, vmem_block_budget_bytes // (8 * plane_bytes))
    tb = min(B, max_tb)
    grid = (pl.cdiv(B, tb),)
    # TODO(synk): add a row-tile grid axis (with halo DMA) for planes too large
    # to fit a full (TB, H, W) block in VMEM on v7x.

    io_spec = pl.BlockSpec((tb, None, H, W), lambda i: (i, 0, 0, 0))
    out_sds = jax.ShapeDtypeStruct((B, 1, H, W), x.dtype)

    n_elem = B * H * W
    cost = pl.CostEstimate(
        flops=20 * n_elem,
        transcendentals=n_elem,                       # one sqrt per output pixel
        bytes_accessed=4 * n_elem * itemsize,         # 1 plane read + 3 writes
    )

    mag, v, h = pl.pallas_call(
        _grad_kernel,
        out_shape=(out_sds, out_sds, out_sds),
        grid=grid,
        in_specs=[io_spec],              # only channel 0 is ever DMA'd from HBM
        out_specs=(io_spec, io_spec, io_spec),
        compiler_params=pltpu.CompilerParams(
            dimension_semantics=("parallel",),
            vmem_limit_bytes=32 * 1024 * 1024,
        ),
        cost_estimate=cost,
    )(x)
    return mag, v, h


def _reference(x):
    """Pure-JAX reference using lax.conv (cross-correlation, like F.conv2d)."""
    kernel_v = jnp.array([[1.0, 0.0, -1.0],
                          [2.0, 0.0, -2.0],
                          [1.0, 0.0, -1.0]], jnp.float32)[None, None]
    kernel_h = jnp.array([[1.0, 2.0, 1.0],
                          [0.0, 0.0, 0.0],
                          [-1.0, -2.0, -1.0]], jnp.float32)[None, None]
    x0 = x[:, 0:1]
    dn = jax.lax.conv_dimension_numbers(x0.shape, kernel_v.shape,
                                        ("NCHW", "OIHW", "NCHW"))
    v = jax.lax.conv_general_dilated(x0, kernel_v, (1, 1), ((1, 1), (1, 1)),
                                     dimension_numbers=dn)
    h = jax.lax.conv_general_dilated(x0, kernel_h, (1, 1), ((1, 1), (1, 1)),
                                     dimension_numbers=dn)
    mag = jnp.sqrt(v * v + h * h + 1e-6)
    return mag, v, h


if __name__ == "__main__":
    key = jax.random.PRNGKey(0)
    x = jax.random.normal(key, (2, 4, 16, 16), dtype=jnp.float32)

    mag, v, h = get_gradient(x)
    jax.block_until_ready((mag, v, h))

    mag_r, v_r, h_r = _reference(x)
    assert mag.shape == (2, 1, 16, 16)
    assert v.shape == (2, 1, 16, 16)
    assert h.shape == (2, 1, 16, 16)
    assert jnp.allclose(v, v_r, atol=1e-5)
    assert jnp.allclose(h, h_r, atol=1e-5)
    assert jnp.allclose(mag, mag_r, atol=1e-5)

    print("KERNEL_OK")
</pallas_src>

<mosaic_0001>
module attributes {stable_mosaic.version = 11 : i64} {
  func.func @_grad_kernel(%arg0: i32, %arg1: memref<2x1x16x16xf32, #tpu.memory_space<vmem>>, %arg2: memref<2x1x16x16xf32, #tpu.memory_space<vmem>>, %arg3: memref<2x1x16x16xf32, #tpu.memory_space<vmem>>, %arg4: memref<2x1x16x16xf32, #tpu.memory_space<vmem>>) attributes {dimension_semantics = [#tpu.dimension_semantics<parallel>], iteration_bounds = array<i64: 1>, scalar_prefetch = 0 : i64, scratch_operands = 0 : i64, tpu.core_type = #tpu.core_type<tc>, window_params = [{transform_indices = @transform_0, window_bounds = array<i64: 2, 1, 16, 16>}, {transform_indices = @transform_1, window_bounds = array<i64: 2, 1, 16, 16>}, {transform_indices = @transform_2, window_bounds = array<i64: 2, 1, 16, 16>}, {transform_indices = @transform_3, window_bounds = array<i64: 2, 1, 16, 16>}]} {
    %c0 = arith.constant 0 : index
    %c0_0 = arith.constant 0 : index
    %c0_1 = arith.constant 0 : index
    %c0_2 = arith.constant 0 : index
    %0 = vector.load %arg1[%c0, %c0_0, %c0_1, %c0_2] : memref<2x1x16x16xf32, #tpu.memory_space<vmem>>, vector<2x1x16x16xf32>
    %1 = vector.shape_cast %0 : vector<2x1x16x16xf32> to vector<2x16x16xf32>
    %2 = tpu.iota {dimensions = array<i32: 1>} : vector<2x16x16xi32>
    %3 = tpu.iota {dimensions = array<i32: 2>} : vector<2x16x16xi32>
    %c0_i32 = arith.constant 0 : i32
    %4 = vector.broadcast %c0_i32 : i32 to vector<2x16x16xi32>
    %5 = arith.cmpi eq, %2, %4 : vector<2x16x16xi32>
    %c15_i32 = arith.constant 15 : i32
    %6 = vector.broadcast %c15_i32 : i32 to vector<2x16x16xi32>
    %7 = arith.cmpi eq, %2, %6 : vector<2x16x16xi32>
    %c0_i32_3 = arith.constant 0 : i32
    %8 = vector.broadcast %c0_i32_3 : i32 to vector<2x16x16xi32>
    %9 = arith.cmpi eq, %3, %8 : vector<2x16x16xi32>
    %c15_i32_4 = arith.constant 15 : i32
    %10 = vector.broadcast %c15_i32_4 : i32 to vector<2x16x16xi32>
    %11 = arith.cmpi eq, %3, %10 : vector<2x16x16xi32>
    %c1_i32 = arith.constant 1 : i32
    %12 = tpu.dynamic_rotate %1 by %c1_i32 dim 1 : vector<2x16x16xf32>, i32 -> vector<2x16x16xf32>
    %cst = arith.constant 0.000000e+00 : f32
    %13 = vector.broadcast %cst : f32 to vector<2x16x16xf32>
    %14 = arith.select %5, %13, %12 : vector<2x16x16xi1>, vector<2x16x16xf32>
    %c15_i32_5 = arith.constant 15 : i32
    %15 = tpu.dynamic_rotate %1 by %c15_i32_5 dim 1 : vector<2x16x16xf32>, i32 -> vector<2x16x16xf32>
    %cst_6 = arith.constant 0.000000e+00 : f32
    %16 = vector.broadcast %cst_6 : f32 to vector<2x16x16xf32>
    %17 = arith.select %7, %16, %15 : vector<2x16x16xi1>, vector<2x16x16xf32>
    %cst_7 = arith.constant 2.000000e+00 : f32
    %18 = vector.broadcast %cst_7 : f32 to vector<2x16x16xf32>
    %19 = arith.mulf %18, %1 : vector<2x16x16xf32>
    %20 = arith.addf %14, %19 : vector<2x16x16xf32>
    %21 = arith.addf %20, %17 : vector<2x16x16xf32>
    %22 = arith.subf %14, %17 : vector<2x16x16xf32>
    %c1_i32_8 = arith.constant 1 : i32
    %23 = tpu.dynamic_rotate %21 by %c1_i32_8 dim 2 : vector<2x16x16xf32>, i32 -> vector<2x16x16xf32>
    %cst_9 = arith.constant 0.000000e+00 : f32
    %24 = vector.broadcast %cst_9 : f32 to vector<2x16x16xf32>
    %25 = arith.select %9, %24, %23 : vector<2x16x16xi1>, vector<2x16x16xf32>
    %c15_i32_10 = arith.constant 15 : i32
    %26 = tpu.dynamic_rotate %21 by %c15_i32_10 dim 2 : vector<2x16x16xf32>, i32 -> vector<2x16x16xf32>
    %cst_11 = arith.constant 0.000000e+00 : f32
    %27 = vector.broadcast %cst_11 : f32 to vector<2x16x16xf32>
    %28 = arith.select %11, %27, %26 : vector<2x16x16xi1>, vector<2x16x16xf32>
    %c1_i32_12 = arith.constant 1 : i32
    %29 = tpu.dynamic_rotate %22 by %c1_i32_12 dim 2 : vector<2x16x16xf32>, i32 -> vector<2x16x16xf32>
    %cst_13 = arith.constant 0.000000e+00 : f32
    %30 = vector.broadcast %cst_13 : f32 to vector<2x16x16xf32>
    %31 = arith.select %9, %30, %29 : vector<2x16x16xi1>, vector<2x16x16xf32>
    %c15_i32_14 = arith.constant 15 : i32
    %32 = tpu.dynamic_rotate %22 by %c15_i32_14 dim 2 : vector<2x16x16xf32>, i32 -> vector<2x16x16xf32>
    %cst_15 = arith.constant 0.000000e+00 : f32
    %33 = vector.broadcast %cst_15 : f32 to vector<2x16x16xf32>
    %34 = arith.select %11, %33, %32 : vector<2x16x16xi1>, vector<2x16x16xf32>
    %35 = arith.subf %25, %28 : vector<2x16x16xf32>
    %cst_16 = arith.constant 2.000000e+00 : f32
    %36 = vector.broadcast %cst_16 : f32 to vector<2x16x16xf32>
    %37 = arith.mulf %36, %22 : vector<2x16x16xf32>
    %38 = arith.addf %31, %37 : vector<2x16x16xf32>
    %39 = arith.addf %38, %34 : vector<2x16x16xf32>
    %40 = arith.mulf %35, %35 : vector<2x16x16xf32>
    %41 = arith.mulf %39, %39 : vector<2x16x16xf32>
    %42 = arith.addf %40, %41 : vector<2x16x16xf32>
    %cst_17 = arith.constant 9.99999997E-7 : f32
    %43 = vector.broadcast %cst_17 : f32 to vector<2x16x16xf32>
    %44 = arith.addf %42, %43 : vector<2x16x16xf32>
    %45 = math.sqrt %44 : vector<2x16x16xf32>
    %c0_18 = arith.constant 0 : index
    %c0_19 = arith.constant 0 : index
    %c0_20 = arith.constant 0 : index
    %c0_21 = arith.constant 0 : index
    %46 = vector.load %arg2[%c0_18, %c0_19, %c0_20, %c0_21] : memref<2x1x16x16xf32, #tpu.memory_space<vmem>>, vector<2x1x16x16xf32>
    %47 = vector.shape_cast %46 : vector<2x1x16x16xf32> to vector<2x16x16xf32>
    %48 = vector.shape_cast %45 : vector<2x16x16xf32> to vector<2x1x16x16xf32>
    tpu.vector_store %arg2[%c0_18, %c0_19, %c0_20, %c0_21], %48 {strides = array<i32>} : memref<2x1x16x16xf32, #tpu.memory_space<vmem>>, vector<2x1x16x16xf32>,
    %c0_22 = arith.constant 0 : index
    %c0_23 = arith.constant 0 : index
    %c0_24 = arith.constant 0 : index
    %c0_25 = arith.constant 0 : index
    %49 = vector.load %arg3[%c0_22, %c0_23, %c0_24, %c0_25] : memref<2x1x16x16xf32, #tpu.memory_space<vmem>>, vector<2x1x16x16xf32>
    %50 = vector.shape_cast %49 : vector<2x1x16x16xf32> to vector<2x16x16xf32>
    %51 = vector.shape_cast %35 : vector<2x16x16xf32> to vector<2x1x16x16xf32>
    tpu.vector_store %arg3[%c0_22, %c0_23, %c0_24, %c0_25], %51 {strides = array<i32>} : memref<2x1x16x16xf32, #tpu.memory_space<vmem>>, vector<2x1x16x16xf32>,
    %c0_26 = arith.constant 0 : index
    %c0_27 = arith.constant 0 : index
    %c0_28 = arith.constant 0 : index
    %c0_29 = arith.constant 0 : index
    %52 = vector.load %arg4[%c0_26, %c0_27, %c0_28, %c0_29] : memref<2x1x16x16xf32, #tpu.memory_space<vmem>>, vector<2x1x16x16xf32>
    %53 = vector.shape_cast %52 : vector<2x1x16x16xf32> to vector<2x16x16xf32>
    %54 = vector.shape_cast %39 : vector<2x16x16xf32> to vector<2x1x16x16xf32>
    tpu.vector_store %arg4[%c0_26, %c0_27, %c0_28, %c0_29], %54 {strides = array<i32>} : memref<2x1x16x16xf32, #tpu.memory_space<vmem>>, vector<2x1x16x16xf32>,
    return
  }
  func.func @transform_0(%arg0: i32) -> (i32, i32, i32, i32) {
    %c0_i32 = arith.constant 0 : i32
    %c0_i32_0 = arith.constant 0 : i32
    %c0_i32_1 = arith.constant 0 : i32
    %c0_i32_2 = arith.constant 0 : i32
    return %arg0, %c0_i32, %c0_i32_0, %c0_i32_1 : i32, i32, i32, i32
  }
  func.func @transform_1(%arg0: i32) -> (i32, i32, i32, i32) {
    %c0_i32 = arith.constant 0 : i32
    %c0_i32_0 = arith.constant 0 : i32
    %c0_i32_1 = arith.constant 0 : i32
    %c0_i32_2 = arith.constant 0 : i32
    return %arg0, %c0_i32, %c0_i32_0, %c0_i32_1 : i32, i32, i32, i32
  }
  func.func @transform_2(%arg0: i32) -> (i32, i32, i32, i32) {
    %c0_i32 = arith.constant 0 : i32
    %c0_i32_0 = arith.constant 0 : i32
    %c0_i32_1 = arith.constant 0 : i32
    %c0_i32_2 = arith.constant 0 : i32
    return %arg0, %c0_i32, %c0_i32_0, %c0_i32_1 : i32, i32, i32, i32
  }
  func.func @transform_3(%arg0: i32) -> (i32, i32, i32, i32) {
    %c0_i32 = arith.constant 0 : i32
    %c0_i32_0 = arith.constant 0 : i32
    %c0_i32_1 = arith.constant 0 : i32
    %c0_i32_2 = arith.constant 0 : i32
    return %arg0, %c0_i32, %c0_i32_0, %c0_i32_1 : i32, i32, i32, i32
  }
}

</mosaic_0001>

<bundles_post_ra>
// kernel: tpu_custom_call.1
= control target key start
LH: loop header
LB: loop body
LE: loop exit
PB: predicated region body
PF: predicated region fallthrough
CT: control target
= control target key end

     0   :  { %9 = vsyncpa [#allocation3], 0  ;;  %s626_s0 = inlined_call_operand.hbm [shape: f32[2,4,16,16], index: 0, kind: input, shape index: {}]   ;;  %s627_s1 = inlined_call_operand.hbm [shape: f32[2,1,16,16], index: 1, kind: output, shape index: {0}]   ;;  %s628_s2 = inlined_call_operand.hbm [shape: f32[2,1,16,16], index: 2, kind: output, shape index: {1}]   ;;  %s629_s3 = inlined_call_operand.hbm [shape: f32[2,1,16,16], index: 3, kind: output, shape index: {2}]  }
   0x1   :  { %10 = vsyncpa [#allocation4], 0 }
   0x2   :  { %11 = vsyncpa [#allocation7], 0 }
   0x3   :  { %s21_s12 = sld [smem:[#allocation0]]   ;;  %s443_s13 = smov [#allocation2]  }
   0x4   :  { %s29_s14 = sshll.u32 %s443_s13, 4  ;;  %s444_s15 = smov 1024   ;;  %s30_s14 = int_to_ptr.vmem [resolvable:$true] %s29_s14 }
   0x5   :  { %36 = sst [smem:[#allocation10]] %s444_s15  ;;  %s445_s16 = smov 256  }
   0x6   :  { %38 = sst [smem:[#allocation10 + $0x1]] %s445_s16  ;;  %s446_s17 = smov 2  }
   0x7   :  { %40 = sst [smem:[#allocation10 + $0x2]] %s446_s17  ;;  %s447_s19 = smov 128  }
   0x8   :  { %42 = sst [smem:[#allocation10 + $0x3]] %s447_s19  ;;  %s448_s21 = smov 8  }
   0x9   :  { %s351_s18 = sshll.u32 %s21_s12, 26  ;;  %44 = sst [smem:[#allocation10 + $0x4]] %s447_s19 }
   0xa   :  { %s352_s20 = sadd.s32 134217728, %s351_s18  ;;  %46 = sst [smem:[#allocation10 + $0x5]] %s448_s21 }
   0xb   :  { %s449_s22 = smov [#allocation3]   ;;  %s450_s23 = smov 131072  }
   0xc   :  { %48 = dma.general %s626_s0, 512, %s30_s14, %s449_s22, %s450_s23, [#allocation10], %s352_s20, 0  }
   0xd   :  { %437 = dma.done.wait [#allocation3], 512  }
   0xe   :  { %438 = vsyncadd [#allocation3], 4294966784  ;;  %v56_v0 = vlaneseq  ;;  %v52_v3 = vld [vmem:[#allocation2] sm:$0xff]  ;;  %v53_v4 = vld [vmem:[#allocation2 + $0x8] sm:$0xff]  ;;  %s451_s0 = smov 16   ;;  %vm109_vm4 = vcmask 1047680  }
   0xf   :  { %v54_v5 = vld [vmem:[#allocation2 + $0x10] sm:$0xff]  ;;  %v67_v6 = vrot.slane %v52_v3, 7  ;;  %v69_v7 = vrot.slane %v53_v4, 7  ;;  %v80_v8 = vrot.slane %v52_v3, 1  ;;  %v82_v9 = vrot.slane %v53_v4, 1  ;;  %v55_v10 = vld [vmem:[#allocation2 + $0x18] sm:$0xff] }
  0x10   :  { %v57_v1 = vshrl.u32 %v56_v0, 7  ;;  %v68_v11 = vrot.slane %v54_v5, 7  ;;  %v70_v12 = vrot.slane %v55_v10, 7  ;;  %v81_v13 = vrot.slane %v54_v5, 1  ;;  %s452_s26 = smov 113   ;;  %s453_s27 = smov 127  }
  0x11   :  { %v83_v14 = vrot.slane %v55_v10, 1  ;;  %v93_v28 = vmul.f32 2.0, %v52_v3  ;;  %v95_v31 = vmul.f32 2.0, %v54_v5  ;;  %v94_v32 = vmul.f32 2.0, %v53_v4  ;;  %s454_s28 = smov [#allocation6]   ;;  %s455_s30 = smov [#allocation8]  }
  0x12   :  { %v58_v2 = vadd.s32 8, %v57_v1  ;;  %vm61_vm0 = vcmp.eq.s32.totalorder %v57_v1, 0  ;;  %vm71_vm1 = vcmp.lt.s32.totalorder %v57_v1, 1  ;;  %vm84_vm2 = vcmp.lt.s32.totalorder %v57_v1, 7  ;;  %s320_s29 = sshll.u32 %s454_s28, 4  ;;  %s332_s4 = sshll.u32 %s455_s30, 4  ;;  %s321_s29 = int_to_ptr.vmem [resolvable:$true] %s320_s29  ;;  %s333_s4 = int_to_ptr.vmem [resolvable:$true] %s332_s4 }
  0x13   :  { %v74_v15 = vsel %vm71_vm1, %v69_v7, %v67_v6  ;;  %v85_v16 = vsel %vm84_vm2, %v80_v8, %v82_v9  ;;  %v72_v17 = vsel %vm71_vm1, %v67_v6, %v69_v7  ;;  %v87_v18 = vsel %vm84_vm2, %v82_v9, %v80_v8  ;;  %s377_s5 = scalar_lea.vmem %s321_s29, 512  ;;  %p382_p1 = scmp.lt.s32.totalorder %s321_s29, %s321_s29 }
  0x14   :  { %vm64_vm3 = vcmp.eq.s32.totalorder %v58_v2, 15  ;;  %v76_v19 = vsel %vm61_vm0, 0.0, %v74_v15  ;;  %v75_v20 = vsel %vm71_vm1, %v70_v12, %v68_v11  ;;  %v86_v21 = vsel %vm84_vm2, %v81_v13, %v83_v14  ;;  %p378_p0 = scmp.ne.s32.totalorder %s321_s29, %s377_s5  ;;  %p383_p2 = scmp.lt.s32.totalorder %s377_s5, %s377_s5 }
  0x15   :  { %v90_v22 = vsel %vm64_vm3, 0.0, %v87_v18  ;;  %v491_v23 = vsub.f32 %v76_v19, %v85_v16  ;;  %v78_v24 = vsel %vm61_vm0, 0.0, %v75_v20  ;;  %v73_v25 = vsel %vm71_vm1, %v68_v11, %v70_v12 }
  0x16   :  { %v495_v26 = vsub.f32 %v78_v24, %v86_v21  ;;  %v88_v27 = vsel %vm84_vm2, %v83_v14, %v81_v13  ;;  %v500_v29 = vsub.f32 %v72_v17, %v90_v22  ;;  %v97_v34 = vadd.f32 %v93_v28, %v76_v19  ;;  %p384_p3 = por %p383_p2, %p382_p1 }
  0x17   :  { %170 = vrot.lane.b32.xlu0 %v491_v23, %s451_s0  ;;  %v92_v30 = vsel %vm64_vm3, 0.0, %v88_v27  ;;  %v96_v35 = vmul.f32 2.0, %v55_v10  ;;  %v98_v36 = vadd.f32 %v94_v32, %v72_v17  ;;  %v99_v38 = vadd.f32 %v95_v31, %v78_v24 }
  0x18   :  { %176 = vrot.lane.b32.xlu1 %v495_v26, %s451_s0  ;;  %v505_v33 = vsub.f32 %v73_v25, %v92_v30  ;;  %v101_v37 = vadd.f32 %v97_v34, %v85_v16  ;;  %v548_v12 = vand.u32 127, %v56_v0  ;;  %v234_v14 = vmul.f32 2.0, %v491_v23  ;;  %p385_p4 = pnand %p384_p3, %p378_p0 }
  0x19   :  { %v102_v39 = vadd.f32 %v98_v36, %v90_v22  ;;  %v100_v40 = vadd.f32 %v96_v35, %v73_v25  ;;  %v103_v41 = vadd.f32 %v99_v38, %v86_v21  ;;  %v235_v19 = vmul.f32 2.0, %v500_v29 }
  0x1a   :  { %vm65_vm5 = vcmp.eq.s32.totalorder %v548_v12, 0  ;;  %vm66_vm6 = vcmp.eq.s32.totalorder %v548_v12, 15  ;;  %vm290_vm7 = vcmask 130048   ;;  %v236_v38 = vmul.f32 2.0, %v495_v26 }
  0x1b   :  { %173 = vrot.lane.b32.xlu0 %v500_v29, %s451_s0  ;;  %v104_v42 = vadd.f32 %v100_v40, %v92_v30 }
  0x1c   :  { %179 = vrot.lane.b32.xlu1 %v505_v33, %s451_s0 }
  0x1f   :  { %110 = vrot.lane.b32.xlu0 %v101_v37, %s451_s0 }
  0x20   :  { %113 = vrot.lane.b32.xlu1 %v102_v39, %s451_s0 }
  0x23   :  { %116 = vrot.lane.b32.xlu0 %v103_v41, %s451_s0 }
  0x24   :  { %119 = vrot.lane.b32.xlu1 %v104_v42, %s451_s0 }
  0x89   :  { %v171_v43 = vpop.permute.xlu0 %170 }
  0x8a   :  { %v172_v44 = vsel %vm109_vm4, %v171_v43, %v491_v23  ;;  %v177_v45 = vpop.permute.xlu1 %176 }
  0x8b   :  { %182 = vrot.lane.b32.xlu0 %v172_v44, %s451_s0  ;;  %v178_v46 = vsel %vm109_vm4, %v177_v45, %v495_v26 }
  0x8d   :  { %v174_v47 = vpop.permute.xlu0 %173 }
  0x8e   :  { %v175_v48 = vsel %vm109_vm4, %v174_v47, %v500_v29  ;;  %v180_v49 = vpop.permute.xlu1 %179 }
  0x8f   :  { %186 = vrot.lane.b32.xlu0 %v178_v46, %s451_s0  ;;  %184 = vrot.lane.b32.xlu1 %v175_v48, %s451_s0  ;;  %v181_v50 = vsel %vm109_vm4, %v180_v49, %v505_v33 }
  0x91   :  { %v111_v51 = vpop.permute.xlu0 %110 }
  0x92   :  { %v112_v52 = vsel %vm109_vm4, %v111_v51, %v101_v37  ;;  %v114_v53 = vpop.permute.xlu1 %113 }
  0x93   :  { %188 = vrot.lane.b32.xlu1 %v181_v50, %s451_s0  ;;  %122 = vrot.lane.b32.xlu0 %v112_v52, %s451_s0  ;;  %v115_v54 = vsel %vm109_vm4, %v114_v53, %v102_v39  ;;  %v237_v50 = vmul.f32 2.0, %v505_v33 }
  0x95   :  { %v117_v55 = vpop.permute.xlu0 %116 }
  0x96   :  { %v118_v56 = vsel %vm109_vm4, %v117_v55, %v103_v41  ;;  %v120_v57 = vpop.permute.xlu1 %119 }
  0x97   :  { %126 = vrot.lane.b32.xlu0 %v118_v56, %s451_s0  ;;  %124 = vrot.lane.b32.xlu1 %v115_v54, %s451_s0  ;;  %v121_v58 = vsel %vm109_vm4, %v120_v57, %v104_v42 }
  0x9b   :  { %128 = vrot.lane.b32.xlu1 %v121_v58, %s451_s0 }
  0xfd   :  { %v183_v59 = vpop.permute.xlu0 %182 }
  0xfe   :  { %v190_v60 = vsel %vm109_vm4, %v183_v59, %v491_v23 }
  0xff   :  { %198 = vrot.lane.b32.xlu0 %v190_v60, %s452_s26 }
 0x101   :  { %v187_v61 = vpop.permute.xlu0 %186  ;;  %v185_v62 = vpop.permute.xlu1 %184 }
 0x102   :  { %v192_v63 = vsel %vm109_vm4, %v187_v61, %v495_v26  ;;  %v191_v1 = vsel %vm109_vm4, %v185_v62, %v500_v29 }
 0x103   :  { %202 = vrot.lane.b32.xlu0 %v192_v63, %s452_s26  ;;  %200 = vrot.lane.b32.xlu1 %v191_v1, %s452_s26 }
 0x105   :  { %v189_v2 = vpop.permute.xlu1 %188  ;;  %v123_v3 = vpop.permute.xlu0 %122 }
 0x106   :  { %v193_v4 = vsel %vm109_vm4, %v189_v2, %v505_v33  ;;  %v130_v5 = vsel %vm109_vm4, %v123_v3, %v101_v37 }
 0x107   :  { %214 = vrot.lane.b32.xlu0 %v190_v60, %s453_s27  ;;  %204 = vrot.lane.b32.xlu1 %v193_v4, %s452_s26 }
 0x109   :  { %v127_v6 = vpop.permute.xlu0 %126  ;;  %v125_v7 = vpop.permute.xlu1 %124 }
 0x10a   :  { %v132_v8 = vsel %vm109_vm4, %v127_v6, %v103_v41  ;;  %v131_v9 = vsel %vm109_vm4, %v125_v7, %v102_v39 }
 0x10b   :  { %138 = vrot.lane.b32.xlu0 %v130_v5, %s452_s26  ;;  %216 = vrot.lane.b32.xlu1 %v191_v1, %s453_s27 }
 0x10d   :  { %v129_v10 = vpop.permute.xlu1 %128 }
 0x10e   :  { %v133_v11 = vsel %vm109_vm4, %v129_v10, %v104_v42 }
 0x10f   :  { %142 = vrot.lane.b32.xlu0 %v132_v8, %s452_s26  ;;  %140 = vrot.lane.b32.xlu1 %v131_v9, %s452_s26 }
 0x113   :  { %154 = vrot.lane.b32.xlu0 %v130_v5, %s453_s27  ;;  %144 = vrot.lane.b32.xlu1 %v133_v11, %s452_s26 }
 0x117   :  { %158 = vrot.lane.b32.xlu0 %v132_v8, %s453_s27  ;;  %156 = vrot.lane.b32.xlu1 %v131_v9, %s453_s27 }
 0x11b   :  { %218 = vrot.lane.b32.xlu0 %v192_v63, %s453_s27  ;;  %160 = vrot.lane.b32.xlu1 %v133_v11, %s453_s27 }
 0x11f   :  { %220 = vrot.lane.b32.xlu1 %v193_v4, %s453_s27 }
 0x171   :  { %v199_v13 = vpop.permute.xlu0 %198 }
 0x172   :  { %v210_v17 = vsel %vm65_vm5, 0.0, %v199_v13 }
 0x173   :  { %v238_v18 = vadd.f32 %v234_v14, %v210_v17 }
 0x175   :  { %v203_v15 = vpop.permute.xlu0 %202  ;;  %v201_v16 = vpop.permute.xlu1 %200 }
 0x176   :  { %v211_v0 = vsel %vm65_vm5, 0.0, %v201_v16  ;;  %v212_v39 = vsel %vm65_vm5, 0.0, %v203_v15 }
 0x177   :  { %v239_v24 = vadd.f32 %v235_v19, %v211_v0  ;;  %v240_v51 = vadd.f32 %v236_v38, %v212_v39 }
 0x179   :  { %v215_v20 = vpop.permute.xlu0 %214  ;;  %v205_v21 = vpop.permute.xlu1 %204 }
 0x17a   :  { %v226_v22 = vsel %vm66_vm6, 0.0, %v215_v20  ;;  %v213_v57 = vsel %vm65_vm5, 0.0, %v205_v21 }
 0x17b   :  { %v242_v23 = vadd.f32 %v238_v18, %v226_v22  ;;  %v241_v63 = vadd.f32 %v237_v50, %v213_v57 }
 0x17d   :  { %299 = vst.msk [vmem:[#allocation8] sm:$0xff] %vm290_vm7, %v242_v23  ;;  %v139_v25 = vpop.permute.xlu0 %138  ;;  %v217_v27 = vpop.permute.xlu1 %216  ;;  %v250_v40 = vmul.f32 %v242_v23, %v242_v23 }
 0x17e   :  { %v227_v28 = vsel %vm66_vm6, 0.0, %v217_v27  ;;  %v150_v35 = vsel %vm65_vm5, 0.0, %v139_v25 }
 0x17f   :  { %v243_v30 = vadd.f32 %v239_v24, %v227_v28 }
 0x181   :  { %300 = vst.msk [vmem:[#allocation8 + $0x8] sm:$0xff] %vm290_vm7, %v243_v30  ;;  %v143_v29 = vpop.permute.xlu0 %142  ;;  %v141_v31 = vpop.permute.xlu1 %140  ;;  %v251_v52 = vmul.f32 %v243_v30, %v243_v30 }
 0x182   :  { %v152_v44 = vsel %vm65_vm5, 0.0, %v143_v29  ;;  %v151_v45 = vsel %vm65_vm5, 0.0, %v141_v31 }
 0x185   :  { %v155_v32 = vpop.permute.xlu0 %154  ;;  %v145_v34 = vpop.permute.xlu1 %144 }
 0x186   :  { %v166_v36 = vsel %vm66_vm6, 0.0, %v155_v32  ;;  %v153_v58 = vsel %vm65_vm5, 0.0, %v145_v34 }
 0x187   :  { %v230_v37 = vsub.f32 %v150_v35, %v166_v36 }
 0x189   :  { %v246_v41 = vmul.f32 %v230_v37, %v230_v37  ;;  %295 = vst.msk [vmem:[#allocation6] sm:$0xff] %vm290_vm7, %v230_v37  ;;  %v159_v42 = vpop.permute.xlu0 %158  ;;  %v157_v43 = vpop.permute.xlu1 %156 }
 0x18a   :  { %v168_v46 = vsel %vm66_vm6, 0.0, %v159_v42  ;;  %v167_v26 = vsel %vm66_vm6, 0.0, %v157_v43 }
 0x18b   :  { %v254_v47 = vadd.f32 %v250_v40, %v246_v41  ;;  %v232_v48 = vsub.f32 %v152_v44, %v168_v46  ;;  %v231_v49 = vsub.f32 %v151_v45, %v167_v26 }
 0x18d   :  { %v581_v53 = vadd.f32 1e-06, %v254_v47  ;;  %297 = vst.msk [vmem:[#allocation6 + $0x10] sm:$0xff] %vm290_vm7, %v232_v48  ;;  %v247_v54 = vmul.f32 %v231_v49, %v231_v49  ;;  %296 = vst.msk [vmem:[#allocation6 + $0x8] sm:$0xff] %vm290_vm7, %v231_v49  ;;  %v219_v55 = vpop.permute.xlu0 %218  ;;  %v161_v56 = vpop.permute.xlu1 %160  ;;  %v248_v1 = vmul.f32 %v232_v48, %v232_v48 }
 0x18e   :  { %v228_v33 = vsel %vm66_vm6, 0.0, %v219_v55  ;;  %v169_v59 = vsel %vm66_vm6, 0.0, %v161_v56 }
 0x18f   :  { %369 = vrsqrt.f32 %v581_v53  ;;  %v255_v60 = vadd.f32 %v251_v52, %v247_v54  ;;  %v244_v61 = vadd.f32 %v240_v51, %v228_v33  ;;  %v233_v62 = vsub.f32 %v153_v58, %v169_v59 }
 0x191   :  { %v259_v2 = vadd.f32 1e-06, %v255_v60  ;;  %v252_v3 = vmul.f32 %v244_v61, %v244_v61  ;;  %301 = vst.msk [vmem:[#allocation8 + $0x10] sm:$0xff] %vm290_vm7, %v244_v61  ;;  %298 = vst.msk [vmem:[#allocation6 + $0x18] sm:$0xff] %vm290_vm7, %v233_v62  ;;  %v221_v4 = vpop.permute.xlu1 %220 }
 0x192   :  { %v229_v5 = vsel %vm66_vm6, 0.0, %v221_v4 }
 0x193   :  { %388 = shalt.err (!%p385_p4)
}
 0x194   :  { %s456_s6 = smov 128   ;;  %s457_s7 = smov 8   ;;  %371 = vrsqrt.f32 %v259_v2  ;;  %v256_v6 = vadd.f32 %v252_v3, %v248_v1  ;;  %v245_v7 = vadd.f32 %v241_v63, %v229_v5  ;;  %v249_v9 = vmul.f32 %v233_v62, %v233_v62 }
 0x195   :  { %326 = dma.vmem_to_hbm [thread:$0]  %s321_s29, 512, %s628_s2, [#allocation7], %s456_s6, %s456_s6, %s457_s7  }
 0x196   :  { %v260_v8 = vadd.f32 1e-06, %v256_v6  ;;  %v253_v10 = vmul.f32 %v245_v7, %v245_v7  ;;  %302 = vst.msk [vmem:[#allocation8 + $0x18] sm:$0xff] %vm290_vm7, %v245_v7  ;;  %s397_s10 = scalar_lea.vmem %s333_s4, 512  ;;  %p402_p6 = scmp.lt.s32.totalorder %s333_s4, %s333_s4 }
 0x197   :  { %p398_p5 = scmp.ne.s32.totalorder %s333_s4, %s397_s10  ;;  %p403_p7 = scmp.lt.s32.totalorder %s397_s10, %s397_s10 }
 0x199   :  { %p404_p8 = por %p403_p7, %p402_p6 }
 0x19b   :  { %p405_p9 = pnand %p404_p8, %p398_p5 }
 0x19d   :  { %408 = shalt.err (!%p405_p9)
}
 0x19e   :  { %338 = dma.vmem_to_hbm [thread:$0]  %s333_s4, 512, %s629_s3, [#allocation7], %s456_s6, %s456_s6, %s457_s7   ;;  %373 = vrsqrt.f32 %v260_v8  ;;  %v257_v11 = vadd.f32 %v253_v10, %v249_v9  ;;  %v370_v13 = vpop.eup %369  ;;  %vm264_vm8 = vcmp.eq.f32.partialorder %v581_v53, inf  ;;  %v267_v15 = vand.u32 2147483648, %v581_v53 }
 0x19f   :  { %v263_v14 = vmul.f32 %v370_v13, %v581_v53  ;;  %vm266_vm9 = vcmp.eq.f32.partialorder %v581_v53, 0.0  ;;  %vm271_vm10 = vcmp.eq.f32.partialorder %v259_v2, inf  ;;  %v274_v20 = vand.u32 2147483648, %v259_v2  ;;  %s458_s3 = smov [#allocation5]  }
 0x1a0   :  { %v261_v12 = vadd.f32 1e-06, %v257_v11  ;;  %vm273_vm11 = vcmp.eq.f32.partialorder %v259_v2, 0.0  ;;  %vm278_vm12 = vcmp.eq.f32.partialorder %v260_v8, inf  ;;  %v281_v24 = vand.u32 2147483648, %v260_v8  ;;  %s308_s12 = sshll.u32 %s458_s3, 4  ;;  %s309_s12 = int_to_ptr.vmem [resolvable:$true] %s308_s12 }
 0x1a1   :  { %v265_v16 = vsel %vm264_vm8, %v581_v53, %v263_v14  ;;  %v372_v17 = vpop.eup %371  ;;  %vm280_vm13 = vcmp.eq.f32.partialorder %v260_v8, 0.0  ;;  %s417_s13 = scalar_lea.vmem %s309_s12, 512  ;;  %p422_p11 = scmp.lt.s32.totalorder %s309_s12, %s309_s12 }
 0x1a2   :  { %375 = vrsqrt.f32 %v261_v12  ;;  %v268_v18 = vsel %vm266_vm9, %v267_v15, %v265_v16  ;;  %v270_v19 = vmul.f32 %v372_v17, %v259_v2  ;;  %vm285_vm14 = vcmp.eq.f32.partialorder %v261_v12, inf  ;;  %p418_p10 = scmp.ne.s32.totalorder %s309_s12, %s417_s13  ;;  %p423_p12 = scmp.lt.s32.totalorder %s417_s13, %s417_s13 }
 0x1a3   :  { %291 = vst.msk [vmem:[#allocation5] sm:$0xff] %vm290_vm7, %v268_v18  ;;  %v288_v29 = vand.u32 2147483648, %v261_v12  ;;  %vm287_vm15 = vcmp.eq.f32.partialorder %v261_v12, 0.0 }
 0x1a4   :  { %v272_v21 = vsel %vm271_vm10, %v259_v2, %v270_v19  ;;  %p424_p13 = por %p423_p12, %p422_p11 }
 0x1a5   :  { %v275_v22 = vsel %vm273_vm11, %v274_v20, %v272_v21 }
 0x1a6   :  { %292 = vst.msk [vmem:[#allocation5 + $0x8] sm:$0xff] %vm290_vm7, %v275_v22  ;;  %p425_p0 = pnand %p424_p13, %p418_p10 }
 0x1ab   :  { %v374_v0 = vpop.eup %373 }
 0x1ac   :  { %v277_v23 = vmul.f32 %v374_v0, %v260_v8 }
 0x1ae   :  { %v279_v25 = vsel %vm278_vm12, %v260_v8, %v277_v23 }
 0x1af   :  { %v376_v27 = vpop.eup %375  ;;  %v282_v28 = vsel %vm280_vm13, %v281_v24, %v279_v25 }
 0x1b0   :  { %v284_v30 = vmul.f32 %v376_v27, %v261_v12  ;;  %293 = vst.msk [vmem:[#allocation5 + $0x10] sm:$0xff] %vm290_vm7, %v282_v28 }
 0x1b2   :  { %v286_v31 = vsel %vm285_vm14, %v261_v12, %v284_v30 }
 0x1b3   :  { %v289_v32 = vsel %vm287_vm15, %v288_v29, %v286_v31 }
 0x1b4   :  { %294 = vst.msk [vmem:[#allocation5 + $0x18] sm:$0xff] %vm290_vm7, %v289_v32 }
 0x1b5   :  { %428 = shalt.err (!%p425_p0)
}
 0x1b6   :  { %314 = dma.vmem_to_hbm [thread:$0]  %s309_s12, 512, %s627_s1, [#allocation4], %s456_s6, %s456_s6, %s457_s7  }
 0x1b7   :  { %439 = dma.done.wait [#allocation4], 512  }
 0x1b8   :  { %440 = vsyncadd [#allocation4], 4294966784 }
 0x1b9   :  { %441 = dma.done.wait [#allocation7], 1024  }
 0x1ba   :  { %442 = vsyncadd [#allocation7], 4294966272 }
 0x1bb   :  { %348 = vsyncpa [#allocation3], 1 }
 0x1bc   :  { %349 = vsyncpa [#allocation4], 1 }
 0x1bd   :  { %350 = vsyncpa [#allocation7], 1 }

</bundles_post_ra>
